<compile_context>
chip_gen: v7x
topology: tpu7x:2x2x1
jax: 0.10.0
libtpu: 0.0.40
codegen_flags: <defaults>
</compile_context>

<pallas_src>
import math

import jax
import jax.numpy as jnp
from jax.experimental import pallas as pl
from jax.experimental.pallas import tpu as pltpu


def _round_up(a, b):
    return ((a + b - 1) // b) * b


# --------------------------------------------------------------------------
# Kernel: fused (collapsed) affine transform + softmax over the feature axis.
# --------------------------------------------------------------------------
def _mlp_softmax_kernel(x_ref, w_ref, b_ref, o_ref):
    # x_ref: (TM, nin) f32  -- cast to bf16 on the VPU (hidden under DMA/MXU)
    # w_ref: (nin, nout_pad) bf16,  b_ref: (1, nout_pad) f32
    x = x_ref[...].astype(jnp.bfloat16)
    logits = jnp.dot(x, w_ref[...], preferred_element_type=jnp.float32) + b_ref[...]
    m = jnp.max(logits, axis=-1, keepdims=True)
    e = jnp.exp(logits - m)                    # padded cols: exp(-1e30 - m) == 0
    s = jnp.sum(e, axis=-1, keepdims=True)
    # Exact divide: HBM-bound kernel, so the extra VPU/EUP cycles are free and
    # rows sum to 1 at f32 precision (approx reciprocal previously failed this).
    o_ref[...] = (e / s).astype(o_ref.dtype)


# --------------------------------------------------------------------------
# One-time parameter preparation (hoisted out of the per-call forward path).
# --------------------------------------------------------------------------
def prepare_classifier_params(weights, biases):
    """Collapse the bias-only Linear chain, pad to lane-dense 128, cast W->bf16.

    weights: list of (in_l, out_l) f32 arrays (already transposed vs. PyTorch)
    biases:  list of (1, out_l) f32 arrays
    Returns (w_bf (nin, nout_pad) bf16, b_pad (1, nout_pad) f32, nout).
    Run ONCE per parameter set; the results are reused by every forward call.
    """
    nout = weights[-1].shape[1]
    w_eff = weights[0].astype(jnp.float32)
    b_eff = biases[0].reshape(1, -1).astype(jnp.float32)
    for w, b in zip(weights[1:], biases[1:]):
        w = w.astype(jnp.float32)
        b = b.reshape(1, -1).astype(jnp.float32)
        w_eff = w_eff @ w
        b_eff = b_eff @ w + b

    nin = w_eff.shape[0]
    nout_pad = max(128, _round_up(nout, 128))
    w_pad = jnp.zeros((nin, nout_pad), jnp.float32).at[:, :nout].set(w_eff)
    # Huge negative bias on pad columns -> softmax prob exactly 0 there.
    # Bias must stay f32 (bf16 would saturate to -inf).
    b_pad = jnp.full((1, nout_pad), -1e30, jnp.float32).at[:, :nout].set(b_eff)
    return w_pad.astype(jnp.bfloat16), b_pad, nout


# --------------------------------------------------------------------------
# Forward: one pallas_call over a batch-tiled grid.
# --------------------------------------------------------------------------
def classifier_forward(x, w_bf, b_pad, nout, *, tm=512, out_dtype=jnp.float32):
    """Fused MLP-classifier forward (matches Classifier.forward, 'mlp' mode).

    x: (N, nin) float32.  w_bf / b_pad / nout come from prepare_classifier_params.
    out_dtype: float32 (exact probabilities) or bfloat16 (halves output HBM traffic).
    """
    N, nin = x.shape
    nin_w, nout_pad = w_bf.shape
    assert nin == nin_w, "x feature dim must match prepared weight"
    out_bytes = 2 if out_dtype == jnp.bfloat16 else 4

    # ---- Batch tile size.
    tm = min(tm, _round_up(N, 8))
    # Ensure >=2 grid steps for larger N so the "parallel" axis feeds both
    # v7x TensorCores (no effect on single-TC v5e/v6e).
    if N >= 64 and N <= tm:
        tm = _round_up(pl.cdiv(N, 2), 8)

    def footprint(t):
        return (2 * t * nin * 4                  # X tile, f32, double-buffered
                + 2 * t * nout_pad * out_bytes   # out tile, double-buffered
                + nin * nout_pad * 2             # W_eff bf16 (single-buffered)
                + nout_pad * 4)                  # bias f32

    VMEM_BUDGET = 24 << 20                       # conservative across v5e/v6e/v7x
    while tm > 8 and footprint(tm) > VMEM_BUDGET:
        tm = _round_up(tm // 2, 8)

    grid = (pl.cdiv(N, tm),)
    vmem_limit = int(min(64 << 20, max(2 * footprint(tm) + (4 << 20), 16 << 20)))

    # TODO(synk): add a K-tiled fallback (grid over nin, f32 accumulator scratch,
    # pl.when init/finalize) if the resident nin*nout_pad weight slab ever
    # exceeds the v7x 64 MiB VMEM budget; not needed for realistic nin here.

    def run(single_buffer_consts):
        if single_buffer_consts:
            w_spec = pl.BlockSpec((nin, nout_pad), lambda i: (0, 0),
                                  pipeline_mode=pl.Buffered(1))
            b_spec = pl.BlockSpec((1, nout_pad), lambda i: (0, 0),
                                  pipeline_mode=pl.Buffered(1))
        else:
            w_spec = pl.BlockSpec((nin, nout_pad), lambda i: (0, 0))
            b_spec = pl.BlockSpec((1, nout_pad), lambda i: (0, 0))
        return pl.pallas_call(
            _mlp_softmax_kernel,
            out_shape=jax.ShapeDtypeStruct((N, nout_pad), out_dtype),
            grid=grid,
            in_specs=[
                pl.BlockSpec((tm, nin), lambda i: (i, 0)),   # X: batch-tiled
                w_spec,                                      # W_eff: VMEM-resident
                b_spec,                                      # b_eff: VMEM-resident
            ],
            out_specs=pl.BlockSpec((tm, nout_pad), lambda i: (i, 0)),
            compiler_params=pltpu.CompilerParams(
                dimension_semantics=("parallel",),
                vmem_limit_bytes=vmem_limit),
        )(x, w_bf, b_pad)

    try:
        out_padded = run(True)
    except Exception:
        # Fallback if this jax version rejects single-buffered constant blocks.
        out_padded = run(False)

    if nout_pad != nout:
        # Pad columns are exactly 0-probability; the slice is an extra HBM pass,
        # only taken when padding was actually added.
        return out_padded[:, :nout]
    return out_padded


# --------------------------------------------------------------------------
# Parameter init matching the module's layer shapes:
#   Linear(nin // 2**l, nin // 2**(l+1)) for l in range(L-1), then (..., nout).
# Xavier-uniform weights; the module zero-fills biases, but the test uses small
# nonzero biases to exercise the affine-collapse bias math.
# --------------------------------------------------------------------------
def init_classifier_params(key, nin, nout, L, *, nonzero_bias=False):
    dims = [(nin // 2 ** l, nin // 2 ** (l + 1)) for l in range(L - 1)]
    dims.append((nin // 2 ** (L - 1), nout))

    weights, biases = [], []
    for (fan_in, fan_out) in dims:
        key, kw, kb = jax.random.split(key, 3)
        bound = math.sqrt(6.0 / (fan_in + fan_out))
        w = jax.random.uniform(kw, (fan_in, fan_out),
                               minval=-bound, maxval=bound, dtype=jnp.float32)
        if nonzero_bias:
            b = 0.1 * jax.random.normal(kb, (1, fan_out), dtype=jnp.float32)
        else:
            b = jnp.zeros((1, fan_out), dtype=jnp.float32)
        weights.append(w)
        biases.append(b)
    return weights, biases


# Pure-JAX references.
def _reference_f32(x, weights, biases):
    out = x
    for w, b in zip(weights, biases):
        out = out @ w + b
    return jax.nn.softmax(out, axis=1)


def _reference_matched(x, weights, biases):
    # Same numerical recipe as the kernel: collapsed affine, bf16 matmul
    # operands, f32 accumulation + f32 softmax.
    w_eff = weights[0].astype(jnp.float32)
    b_eff = biases[0].astype(jnp.float32)
    for w, b in zip(weights[1:], biases[1:]):
        w_eff = w_eff @ w
        b_eff = b_eff @ w + b
    logits = jnp.dot(x.astype(jnp.bfloat16), w_eff.astype(jnp.bfloat16),
                     preferred_element_type=jnp.float32) + b_eff
    return jax.nn.softmax(logits, axis=-1)


if __name__ == "__main__":
    key = jax.random.PRNGKey(0)

    # Small shapes consistent with the module: batch=8, nin=32, L=3, nout=4
    #   layers: 32 -> 16 -> 8 -> 4, then softmax over dim=1.
    N, nin, nout, L = 8, 32, 4, 3

    key, kx = jax.random.split(key)
    x = jax.random.normal(kx, (N, nin), dtype=jnp.float32)
    weights, biases = init_classifier_params(key, nin, nout, L, nonzero_bias=True)

    # One-time parameter preparation (hoisted out of the per-call path).
    w_bf, b_pad, nout_p = prepare_classifier_params(weights, biases)

    out = classifier_forward(x, w_bf, b_pad, nout_p)
    out = jax.block_until_ready(out)
    assert out.shape == (N, nout)

    # Tight check vs. the reference that uses the same bf16 matmul recipe.
    ref_matched = _reference_matched(x, weights, biases)
    assert jnp.allclose(out, ref_matched, atol=3e-3), "mismatch vs matched reference"

    # Semantic check vs. the full-precision layered PyTorch-style reference
    # (slack covers bf16 operand rounding of the collapsed matmul).
    ref_f32 = _reference_f32(x, weights, biases)
    assert jnp.allclose(out, ref_f32, atol=3e-2), "mismatch vs f32 layered reference"

    # Softmax rows sum to 1 (exact divide in the kernel -> f32 precision).
    assert jnp.allclose(jnp.sum(out, axis=1), jnp.ones((N,)), atol=1e-3)

    # bf16-output variant (halves output HBM traffic when the consumer accepts it).
    out_bf16 = classifier_forward(x, w_bf, b_pad, nout_p, out_dtype=jnp.bfloat16)
    out_bf16 = jax.block_until_ready(out_bf16)
    assert out_bf16.shape == (N, nout)
    assert jnp.allclose(out_bf16.astype(jnp.float32), out, atol=1e-2)

    print("KERNEL_OK")
</pallas_src>

<mosaic_0001>
module attributes {stable_mosaic.version = 11 : i64} {
  func.func @_mlp_softmax_kernel(%arg0: i32, %arg1: memref<8x32xf32, #tpu.memory_space<vmem>>, %arg2: memref<32x128xbf16, #tpu.memory_space<vmem>>, %arg3: memref<1x128xf32, #tpu.memory_space<vmem>>, %arg4: memref<8x128xf32, #tpu.memory_space<vmem>>) attributes {dimension_semantics = [#tpu.dimension_semantics<parallel>], iteration_bounds = array<i64: 1>, scalar_prefetch = 0 : i64, scratch_operands = 0 : i64, tpu.core_type = #tpu.core_type<tc>, window_params = [{transform_indices = @transform_0, window_bounds = array<i64: 8, 32>}, {pipeline_mode = #tpu.pipeline_mode<synchronous>, transform_indices = @transform_1, window_bounds = array<i64: 32, 128>}, {pipeline_mode = #tpu.pipeline_mode<synchronous>, transform_indices = @transform_2, window_bounds = array<i64: 1, 128>}, {transform_indices = @transform_3, window_bounds = array<i64: 8, 128>}]} {
    %c0 = arith.constant 0 : index
    %c0_0 = arith.constant 0 : index
    %0 = vector.load %arg1[%c0, %c0_0] : memref<8x32xf32, #tpu.memory_space<vmem>>, vector<8x32xf32>
    %1 = arith.truncf %0 : vector<8x32xf32> to vector<8x32xbf16>
    %c0_1 = arith.constant 0 : index
    %c0_2 = arith.constant 0 : index
    %2 = vector.load %arg2[%c0_1, %c0_2] : memref<32x128xbf16, #tpu.memory_space<vmem>>, vector<32x128xbf16>
    %cst = arith.constant dense<0.000000e+00> : vector<8x128xf32>
    %3 = tpu.matmul %1, %2, %cst {dimension_numbers = #tpu.dot_dimension_numbers<[1], [0], [0], [1], [0, 0, 1, 1], [], []>} : vector<8x32xbf16>, vector<32x128xbf16>, vector<8x128xf32> -> vector<8x128xf32>
    %c0_3 = arith.constant 0 : index
    %c0_4 = arith.constant 0 : index
    %4 = vector.load %arg3[%c0_3, %c0_4] : memref<1x128xf32, #tpu.memory_space<vmem>>, vector<1x128xf32>
    %5 = vector.broadcast %4 : vector<1x128xf32> to vector<8x128xf32>
    %6 = arith.addf %3, %5 : vector<8x128xf32>
    %cst_5 = arith.constant dense<0xFF800000> : vector<8xf32>
    %7 = vector.multi_reduction <maximumf>, %6, %cst_5 [1] : vector<8x128xf32> to vector<8xf32>
    %8 = vector.shape_cast %7 : vector<8xf32> to vector<8x1xf32>
    %9 = vector.broadcast %8 : vector<8x1xf32> to vector<8x128xf32>
    %10 = arith.subf %6, %9 : vector<8x128xf32>
    %11 = math.exp %10 : vector<8x128xf32>
    %cst_6 = arith.constant dense<0.000000e+00> : vector<8xf32>
    %12 = vector.multi_reduction <add>, %11, %cst_6 [1] : vector<8x128xf32> to vector<8xf32>
    %13 = vector.shape_cast %12 : vector<8xf32> to vector<8x1xf32>
    %14 = vector.broadcast %13 : vector<8x1xf32> to vector<8x128xf32>
    %15 = arith.divf %11, %14 : vector<8x128xf32>
    %c0_7 = arith.constant 0 : index
    %c0_8 = arith.constant 0 : index
    %16 = vector.load %arg4[%c0_7, %c0_8] : memref<8x128xf32, #tpu.memory_space<vmem>>, vector<8x128xf32>
    tpu.vector_store %arg4[%c0_7, %c0_8], %15 {strides = array<i32>} : memref<8x128xf32, #tpu.memory_space<vmem>>, vector<8x128xf32>,
    return
  }
  func.func @transform_0(%arg0: i32) -> (i32, i32) {
    %c0_i32 = arith.constant 0 : i32
    %c0_i32_0 = arith.constant 0 : i32
    return %arg0, %c0_i32 : i32, i32
  }
  func.func @transform_1(%arg0: i32) -> (i32, i32) {
    %c0_i32 = arith.constant 0 : i32
    %c0_i32_0 = arith.constant 0 : i32
    %c0_i32_1 = arith.constant 0 : i32
    return %c0_i32, %c0_i32_0 : i32, i32
  }
  func.func @transform_2(%arg0: i32) -> (i32, i32) {
    %c0_i32 = arith.constant 0 : i32
    %c0_i32_0 = arith.constant 0 : i32
    %c0_i32_1 = arith.constant 0 : i32
    return %c0_i32, %c0_i32_0 : i32, i32
  }
  func.func @transform_3(%arg0: i32) -> (i32, i32) {
    %c0_i32 = arith.constant 0 : i32
    %c0_i32_0 = arith.constant 0 : i32
    return %arg0, %c0_i32 : i32, i32
  }
}

module attributes {stable_mosaic.version = 11 : i64} {
  func.func @_mlp_softmax_kernel(%arg0: i32, %arg1: memref<8x32xf32, #tpu.memory_space<vmem>>, %arg2: memref<32x128xbf16, #tpu.memory_space<vmem>>, %arg3: memref<1x128xf32, #tpu.memory_space<vmem>>, %arg4: memref<8x128xf32, #tpu.memory_space<vmem>>) attributes {dimension_semantics = [#tpu.dimension_semantics<parallel>], iteration_bounds = array<i64: 1>, scalar_prefetch = 0 : i64, scratch_operands = 0 : i64, tpu.core_type = #tpu.core_type<tc>, window_params = [{transform_indices = @transform_0, window_bounds = array<i64: 8, 32>}, {pipeline_mode = #tpu.pipeline_mode<synchronous>, transform_indices = @transform_1, window_bounds = array<i64: 32, 128>}, {pipeline_mode = #tpu.pipeline_mode<synchronous>, transform_indices = @transform_2, window_bounds = array<i64: 1, 128>}, {transform_indices = @transform_3, window_bounds = array<i64: 8, 128>}]} {
    %c0 = arith.constant 0 : index
    %c0_0 = arith.constant 0 : index
    %0 = vector.load %arg1[%c0, %c0_0] : memref<8x32xf32, #tpu.memory_space<vmem>>, vector<8x32xf32>
    %1 = arith.truncf %0 : vector<8x32xf32> to vector<8x32xbf16>
    %c0_1 = arith.constant 0 : index
    %c0_2 = arith.constant 0 : index
    %2 = vector.load %arg2[%c0_1, %c0_2] : memref<32x128xbf16, #tpu.memory_space<vmem>>, vector<32x128xbf16>
    %cst = arith.constant dense<0.000000e+00> : vector<8x128xf32>
    %3 = tpu.matmul %1, %2, %cst {dimension_numbers = #tpu.dot_dimension_numbers<[1], [0], [0], [1], [0, 0, 1, 1], [], []>} : vector<8x32xbf16>, vector<32x128xbf16>, vector<8x128xf32> -> vector<8x128xf32>
    %c0_3 = arith.constant 0 : index
    %c0_4 = arith.constant 0 : index
    %4 = vector.load %arg3[%c0_3, %c0_4] : memref<1x128xf32, #tpu.memory_space<vmem>>, vector<1x128xf32>
    %5 = vector.broadcast %4 : vector<1x128xf32> to vector<8x128xf32>
    %6 = arith.addf %3, %5 : vector<8x128xf32>
    %cst_5 = arith.constant dense<0xFF800000> : vector<8xf32>
    %7 = vector.multi_reduction <maximumf>, %6, %cst_5 [1] : vector<8x128xf32> to vector<8xf32>
    %8 = vector.shape_cast %7 : vector<8xf32> to vector<8x1xf32>
    %9 = vector.broadcast %8 : vector<8x1xf32> to vector<8x128xf32>
    %10 = arith.subf %6, %9 : vector<8x128xf32>
    %11 = math.exp %10 : vector<8x128xf32>
    %cst_6 = arith.constant dense<0.000000e+00> : vector<8xf32>
    %12 = vector.multi_reduction <add>, %11, %cst_6 [1] : vector<8x128xf32> to vector<8xf32>
    %13 = vector.shape_cast %12 : vector<8xf32> to vector<8x1xf32>
    %14 = vector.broadcast %13 : vector<8x1xf32> to vector<8x128xf32>
    %15 = arith.divf %11, %14 : vector<8x128xf32>
    %c0_7 = arith.constant 0 : index
    %c0_8 = arith.constant 0 : index
    %16 = vector.load %arg4[%c0_7, %c0_8] : memref<8x128xf32, #tpu.memory_space<vmem>>, vector<8x128xf32>
    tpu.vector_store %arg4[%c0_7, %c0_8], %15 {strides = array<i32>} : memref<8x128xf32, #tpu.memory_space<vmem>>, vector<8x128xf32>,
    return
  }
  func.func @transform_0(%arg0: i32) -> (i32, i32) {
    %c0_i32 = arith.constant 0 : i32
    %c0_i32_0 = arith.constant 0 : i32
    return %arg0, %c0_i32 : i32, i32
  }
  func.func @transform_1(%arg0: i32) -> (i32, i32) {
    %c0_i32 = arith.constant 0 : i32
    %c0_i32_0 = arith.constant 0 : i32
    %c0_i32_1 = arith.constant 0 : i32
    return %c0_i32, %c0_i32_0 : i32, i32
  }
  func.func @transform_2(%arg0: i32) -> (i32, i32) {
    %c0_i32 = arith.constant 0 : i32
    %c0_i32_0 = arith.constant 0 : i32
    %c0_i32_1 = arith.constant 0 : i32
    return %c0_i32, %c0_i32_0 : i32, i32
  }
  func.func @transform_3(%arg0: i32) -> (i32, i32) {
    %c0_i32 = arith.constant 0 : i32
    %c0_i32_0 = arith.constant 0 : i32
    return %arg0, %c0_i32 : i32, i32
  }
}

</mosaic_0001>

<bundles_post_ra>
// kernel: tpu_custom_call.1
= control target key start
LH: loop header
LB: loop body
LE: loop exit
PB: predicated region body
PF: predicated region fallthrough
CT: control target
= control target key end

     0   :  { %8 = vsyncpa [#allocation3], 0  ;;  %s310_s0 = inlined_call_operand.hbm [shape: f32[8,32], index: 0, kind: input, shape index: {}]   ;;  %s311_s1 = inlined_call_operand.hbm [shape: bf16[32,128], index: 1, kind: input, shape index: {}]   ;;  %s312_s2 = inlined_call_operand.vmem [shape: f32[1,128], index: 2, kind: input, shape index: {}]   ;;  %s313_s3 = inlined_call_operand.hbm [shape: f32[8,128], index: 3, kind: output, shape index: {}]  }
   0x1   :  { %9 = vsyncpa [#allocation6], 0 }
   0x2   :  { %10 = vsyncpa [#allocation4], 0  ;;  %s237_s12 = smov [#allocation2]   ;;  %s238_s14 = smov [#allocation5]  }
   0x3   :  { %s17_s13 = sshll.u32 %s237_s12, 4  ;;  %s26_s15 = sshll.u32 %s238_s14, 4  ;;  %s18_s13 = int_to_ptr.vmem [resolvable:$true] %s17_s13  ;;  %s264_s15 = int_to_ptr.vmem [resolvable:$true] %s26_s15 }
   0x4   :  { %s165_s18 = scalar_lea.hbm %s310_s0, 128 }
   0x5   :  { %p166_p0 = scmp.ne.s32.totalorder %s310_s0, %s165_s18  ;;  %p169_p1 = scmp.lt.u32.totalorder %s165_s18, %s310_s0 }
   0x7   :  { %p171_p2 = pnand %p169_p1, %p166_p0 }
   0x9   :  { %174 = shalt.err (!%p171_p2)
}
   0xa   :  { %s175_s23 = scalar_lea.vmem %s18_s13, 128  ;;  %p180_p4 = scmp.lt.s32.totalorder %s18_s13, %s18_s13 }
   0xb   :  { %p176_p3 = scmp.ne.s32.totalorder %s18_s13, %s175_s23  ;;  %p181_p5 = scmp.lt.s32.totalorder %s175_s23, %s175_s23 }
   0xd   :  { %p182_p6 = por %p181_p5, %p180_p4 }
   0xf   :  { %p183_p7 = pnand %p182_p6, %p176_p3 }
  0x11   :  { %186 = shalt.err (!%p183_p7)
}
  0x12   :  { %20 = dma.hbm_to_vmem [thread:$0]  %s310_s0, 128, %s18_s13, [#allocation3]  }
  0x13   :  { %s187_s28 = scalar_lea.hbm %s311_s1, 256 }
  0x14   :  { %p188_p8 = scmp.ne.s32.totalorder %s311_s1, %s187_s28  ;;  %p191_p9 = scmp.lt.u32.totalorder %s187_s28, %s311_s1 }
  0x16   :  { %p193_p10 = pnand %p191_p9, %p188_p8 }
  0x18   :  { %196 = shalt.err (!%p193_p10)
}
  0x19   :  { %s197_s6 = scalar_lea.vmem %s264_s15, 256  ;;  %p202_p12 = scmp.lt.s32.totalorder %s264_s15, %s264_s15 }
  0x1a   :  { %p198_p11 = scmp.ne.s32.totalorder %s264_s15, %s197_s6  ;;  %p203_p13 = scmp.lt.s32.totalorder %s197_s6, %s197_s6 }
  0x1c   :  { %p204_p0 = por %p203_p13, %p202_p12 }
  0x1e   :  { %p205_p1 = pnand %p204_p0, %p198_p11 }
  0x20   :  { %208 = shalt.err (!%p205_p1)
}
  0x21   :  { %s239_s0 = smov 64   ;;  %s240_s7 = smov 4  }
  0x22   :  { %32 = dma.hbm_to_vmem [thread:$0]  %s311_s1, 256, %s264_s15, [#allocation6], %s239_s0, %s239_s0, %s240_s7  }
  0x23   :  { %231 = dma.done.wait [#allocation3], 128  }
  0x24   :  { %232 = vsyncadd [#allocation3], 4294967168 }
  0x25   :  { %233 = dma.done.wait [#allocation6], 256  }
  0x26   :  { %234 = vsyncadd [#allocation6], 4294967040  ;;  %v241_v0 = vmov 0.0   ;;  %vm242_vm0 = vmmov 0   ;;  %v159_v1 = vld [vmem:[#allocation5] sm:$0xff]   ;;  %v160_v2 = vld [vmem:[#allocation5 + $0x8] sm:$0xff]  }
  0x27   :  { %144 = vmatprep.subr.bf16.mxu0 %v241_v0  ;;  %148 = vmatprep.mubr.msk.bf16.mxu0 %vm242_vm0, %v241_v0  ;;  %v42_v3 = vld [vmem:[#allocation2] sm:$0xff]  ;;  %vm67_vm1 = vcmask 261120   ;;  %s243_s1 = smov [#allocation7]  }
  0x28   :  { %145 = vmatpush3.bf16.msra.mxu0 %v159_v1  ;;  %v43_v4 = vpack.c.bf16 %v42_v3, %v42_v3  ;;  %v137_v5 = vld [vmem:[%s312_s2] ss:$0 sm:$0xff]  ;;  %s127_s12 = sshll.u32 %s243_s1, 4  ;;  %s128_s12 = int_to_ptr.vmem [resolvable:$true] %s127_s12 }
  0x29   :  { %146 = vmatprep.subr.bf16.mxu0 %v241_v0  ;;  %s209_s2 = scalar_lea.vmem %s128_s12, 128  ;;  %p214_p3 = scmp.lt.s32.totalorder %s128_s12, %s128_s12 }
  0x2a   :  { %p210_p2 = scmp.ne.s32.totalorder %s128_s12, %s209_s2  ;;  %p215_p4 = scmp.lt.s32.totalorder %s209_s2, %s209_s2 }
  0x2c   :  { %147 = vmatpush3.bf16.msra.mxu0 %v160_v2  ;;  %p216_p5 = por %p215_p4, %p214_p3 }
  0x2e   :  { %p217_p6 = pnand %p216_p5, %p210_p2 }
  0x2f   :  { %149 = vmatmul.mubr.msk.bf16.vlgmr.msra.gmra.mrb[0].mxu0 %vm67_vm1, %v43_v4 }
 0x102   :  { %v105_v6 = vpop.f32.mrb[0].mxu0 }
 0x103   :  { %v106_v7 = vadd.f32 %v137_v5, %v105_v6  ;;  %v150_v8 = vpop.f32.mrb[1].mxu0 }
 0x104   :  { %v108_v9 = vpop.f32.mrb[2].mxu0 }
 0x105   :  { %111 = vmax.xlane.f32.xlu0 %v106_v7  ;;  %v151_v10 = vpop.f32.mrb[3].mxu0 }
 0x192   :  { %v112_v11 = vpop.xlane.xlu0 %111 }
 0x193   :  { %v113_v12 = vsub.f32 %v106_v7, %v112_v11 }
 0x195   :  { %v114_v13 = vmul.f32 1.442695, %v113_v12 }
 0x197   :  { %161 = vpow2.f32 %v114_v13 }
 0x1a1   :  { %v162_v14 = vpop.eup %161 }
 0x1a2   :  { %116 = vadd.xlane.f32.xlu0 %v162_v14 }
 0x22f   :  { %v117_v15 = vpop.xlane.xlu0 %116 }
 0x230   :  { %163 = vrcp.f32 %v117_v15 }
 0x23a   :  { %v164_v16 = vpop.eup %163 }
 0x23b   :  { %v119_v17 = vmul.f32 %v164_v16, %v162_v14 }
 0x23d   :  { %120 = vst [vmem:[#allocation7] sm:$0xff] %v119_v17 }
 0x23e   :  { %220 = shalt.err (!%p217_p6)
}
 0x23f   :  { %s221_s15 = scalar_lea.hbm %s313_s3, 128 }
 0x240   :  { %p222_p7 = scmp.ne.s32.totalorder %s313_s3, %s221_s15  ;;  %p225_p8 = scmp.lt.u32.totalorder %s221_s15, %s313_s3 }
 0x242   :  { %p227_p9 = pnand %p225_p8, %p222_p7 }
 0x244   :  { %230 = shalt.err (!%p227_p9)
}
 0x245   :  { %130 = dma.vmem_to_hbm [thread:$0]  %s128_s12, 128, %s313_s3, [#allocation4]  }
 0x246   :  { %235 = dma.done.wait [#allocation4], 128  }
 0x247   :  { %236 = vsyncadd [#allocation4], 4294967168 }
 0x248   :  { %134 = vsyncpa [#allocation3], 1 }
 0x249   :  { %135 = vsyncpa [#allocation6], 1 }
 0x24a   :  { %136 = vsyncpa [#allocation4], 1 }

// kernel: tpu_custom_call.1
= control target key start
LH: loop header
LB: loop body
LE: loop exit
PB: predicated region body
PF: predicated region fallthrough
CT: control target
= control target key end

     0   :  { %8 = vsyncpa [#allocation3], 0  ;;  %s310_s0 = inlined_call_operand.hbm [shape: f32[8,32], index: 0, kind: input, shape index: {}]   ;;  %s311_s1 = inlined_call_operand.hbm [shape: bf16[32,128], index: 1, kind: input, shape index: {}]   ;;  %s312_s2 = inlined_call_operand.vmem [shape: f32[1,128], index: 2, kind: input, shape index: {}]   ;;  %s313_s3 = inlined_call_operand.hbm [shape: f32[8,128], index: 3, kind: output, shape index: {}]  }
   0x1   :  { %9 = vsyncpa [#allocation6], 0 }
   0x2   :  { %10 = vsyncpa [#allocation4], 0  ;;  %s237_s12 = smov [#allocation2]   ;;  %s238_s14 = smov [#allocation5]  }
   0x3   :  { %s17_s13 = sshll.u32 %s237_s12, 4  ;;  %s26_s15 = sshll.u32 %s238_s14, 4  ;;  %s18_s13 = int_to_ptr.vmem [resolvable:$true] %s17_s13  ;;  %s264_s15 = int_to_ptr.vmem [resolvable:$true] %s26_s15 }
   0x4   :  { %s165_s18 = scalar_lea.hbm %s310_s0, 128 }
   0x5   :  { %p166_p0 = scmp.ne.s32.totalorder %s310_s0, %s165_s18  ;;  %p169_p1 = scmp.lt.u32.totalorder %s165_s18, %s310_s0 }
   0x7   :  { %p171_p2 = pnand %p169_p1, %p166_p0 }
   0x9   :  { %174 = shalt.err (!%p171_p2)
}
   0xa   :  { %s175_s23 = scalar_lea.vmem %s18_s13, 128  ;;  %p180_p4 = scmp.lt.s32.totalorder %s18_s13, %s18_s13 }
   0xb   :  { %p176_p3 = scmp.ne.s32.totalorder %s18_s13, %s175_s23  ;;  %p181_p5 = scmp.lt.s32.totalorder %s175_s23, %s175_s23 }
   0xd   :  { %p182_p6 = por %p181_p5, %p180_p4 }
   0xf   :  { %p183_p7 = pnand %p182_p6, %p176_p3 }
  0x11   :  { %186 = shalt.err (!%p183_p7)
}
  0x12   :  { %20 = dma.hbm_to_vmem [thread:$0]  %s310_s0, 128, %s18_s13, [#allocation3]  }
  0x13   :  { %s187_s28 = scalar_lea.hbm %s311_s1, 256 }
  0x14   :  { %p188_p8 = scmp.ne.s32.totalorder %s311_s1, %s187_s28  ;;  %p191_p9 = scmp.lt.u32.totalorder %s187_s28, %s311_s1 }
  0x16   :  { %p193_p10 = pnand %p191_p9, %p188_p8 }
  0x18   :  { %196 = shalt.err (!%p193_p10)
}
  0x19   :  { %s197_s6 = scalar_lea.vmem %s264_s15, 256  ;;  %p202_p12 = scmp.lt.s32.totalorder %s264_s15, %s264_s15 }
  0x1a   :  { %p198_p11 = scmp.ne.s32.totalorder %s264_s15, %s197_s6  ;;  %p203_p13 = scmp.lt.s32.totalorder %s197_s6, %s197_s6 }
  0x1c   :  { %p204_p0 = por %p203_p13, %p202_p12 }
  0x1e   :  { %p205_p1 = pnand %p204_p0, %p198_p11 }
  0x20   :  { %208 = shalt.err (!%p205_p1)
}
  0x21   :  { %s239_s0 = smov 64   ;;  %s240_s7 = smov 4  }
  0x22   :  { %32 = dma.hbm_to_vmem [thread:$0]  %s311_s1, 256, %s264_s15, [#allocation6], %s239_s0, %s239_s0, %s240_s7  }
  0x23   :  { %231 = dma.done.wait [#allocation3], 128  }
  0x24   :  { %232 = vsyncadd [#allocation3], 4294967168 }
  0x25   :  { %233 = dma.done.wait [#allocation6], 256  }
  0x26   :  { %234 = vsyncadd [#allocation6], 4294967040  ;;  %v241_v0 = vmov 0.0   ;;  %vm242_vm0 = vmmov 0   ;;  %v159_v1 = vld [vmem:[#allocation5] sm:$0xff]   ;;  %v160_v2 = vld [vmem:[#allocation5 + $0x8] sm:$0xff]  }
  0x27   :  { %144 = vmatprep.subr.bf16.mxu0 %v241_v0  ;;  %148 = vmatprep.mubr.msk.bf16.mxu0 %vm242_vm0, %v241_v0  ;;  %v42_v3 = vld [vmem:[#allocation2] sm:$0xff]  ;;  %vm67_vm1 = vcmask 261120   ;;  %s243_s1 = smov [#allocation7]  }
  0x28   :  { %145 = vmatpush3.bf16.msra.mxu0 %v159_v1  ;;  %v43_v4 = vpack.c.bf16 %v42_v3, %v42_v3  ;;  %v137_v5 = vld [vmem:[%s312_s2] ss:$0 sm:$0xff]  ;;  %s127_s12 = sshll.u32 %s243_s1, 4  ;;  %s128_s12 = int_to_ptr.vmem [resolvable:$true] %s127_s12 }
  0x29   :  { %146 = vmatprep.subr.bf16.mxu0 %v241_v0  ;;  %s209_s2 = scalar_lea.vmem %s128_s12, 128  ;;  %p214_p3 = scmp.lt.s32.totalorder %s128_s12, %s128_s12 }
  0x2a   :  { %p210_p2 = scmp.ne.s32.totalorder %s128_s12, %s209_s2  ;;  %p215_p4 = scmp.lt.s32.totalorder %s209_s2, %s209_s2 }
  0x2c   :  { %147 = vmatpush3.bf16.msra.mxu0 %v160_v2  ;;  %p216_p5 = por %p215_p4, %p214_p3 }
  0x2e   :  { %p217_p6 = pnand %p216_p5, %p210_p2 }
  0x2f   :  { %149 = vmatmul.mubr.msk.bf16.vlgmr.msra.gmra.mrb[0].mxu0 %vm67_vm1, %v43_v4 }
 0x102   :  { %v105_v6 = vpop.f32.mrb[0].mxu0 }
 0x103   :  { %v106_v7 = vadd.f32 %v137_v5, %v105_v6  ;;  %v150_v8 = vpop.f32.mrb[1].mxu0 }
 0x104   :  { %v108_v9 = vpop.f32.mrb[2].mxu0 }
 0x105   :  { %111 = vmax.xlane.f32.xlu0 %v106_v7  ;;  %v151_v10 = vpop.f32.mrb[3].mxu0 }
 0x192   :  { %v112_v11 = vpop.xlane.xlu0 %111 }
 0x193   :  { %v113_v12 = vsub.f32 %v106_v7, %v112_v11 }
 0x195   :  { %v114_v13 = vmul.f32 1.442695, %v113_v12 }
 0x197   :  { %161 = vpow2.f32 %v114_v13 }
 0x1a1   :  { %v162_v14 = vpop.eup %161 }
 0x1a2   :  { %116 = vadd.xlane.f32.xlu0 %v162_v14 }
 0x22f   :  { %v117_v15 = vpop.xlane.xlu0 %116 }
 0x230   :  { %163 = vrcp.f32 %v117_v15 }
 0x23a   :  { %v164_v16 = vpop.eup %163 }
 0x23b   :  { %v119_v17 = vmul.f32 %v164_v16, %v162_v14 }
 0x23d   :  { %120 = vst [vmem:[#allocation7] sm:$0xff] %v119_v17 }
 0x23e   :  { %220 = shalt.err (!%p217_p6)
}
 0x23f   :  { %s221_s15 = scalar_lea.hbm %s313_s3, 128 }
 0x240   :  { %p222_p7 = scmp.ne.s32.totalorder %s313_s3, %s221_s15  ;;  %p225_p8 = scmp.lt.u32.totalorder %s221_s15, %s313_s3 }
 0x242   :  { %p227_p9 = pnand %p225_p8, %p222_p7 }
 0x244   :  { %230 = shalt.err (!%p227_p9)
}
 0x245   :  { %130 = dma.vmem_to_hbm [thread:$0]  %s128_s12, 128, %s313_s3, [#allocation4]  }
 0x246   :  { %235 = dma.done.wait [#allocation4], 128  }
 0x247   :  { %236 = vsyncadd [#allocation4], 4294967168 }
 0x248   :  { %134 = vsyncpa [#allocation3], 1 }
 0x249   :  { %135 = vsyncpa [#allocation6], 1 }
 0x24a   :  { %136 = vsyncpa [#allocation4], 1 }

</bundles_post_ra>
